<compile_context>
chip_gen: v6e
topology: v6e:2x2x1
jax: 0.10.0
libtpu: 0.0.40
codegen_flags: <defaults>
</compile_context>

<pallas_src>
import jax
import jax.numpy as jnp
from jax.experimental import pallas as pl
from jax.experimental.pallas import tpu as pltpu


def _round_up(x, m):
    return ((x + m - 1) // m) * m


def _tile_and_pad(dim, tile, align=128):
    """Pad `dim` so it is lane-aligned and evenly divided by the chosen tile."""
    dim_pad = _round_up(dim, align)
    if dim_pad > tile:
        return _round_up(dim_pad, tile), tile
    return dim_pad, dim_pad


# ---------------------------------------------------------------------------
# Kernels
# ---------------------------------------------------------------------------
def _fc_block_kernel_single_k(x_ref, w_ref, shift_ref, o_ref):
    """Fast path: whole K resident -> no accumulator scratch, no RMW."""
    y = jnp.dot(x_ref[...], w_ref[...], preferred_element_type=jnp.float32)
    y = y + shift_ref[...]
    o_ref[...] = jnp.maximum(y, 0.0).astype(o_ref.dtype)


def _fc_block_kernel_multi_k(x_ref, w_ref, shift_ref, o_ref, acc_ref):
    """Grid = (M//tm, N//tn, K//tk), reduction axis (k) last."""
    k = pl.program_id(2)

    @pl.when(k == 0)
    def _():
        # Fold the (bias + BN) shift into the accumulator init: same store
        # count as a zero-init, one fewer epilogue add.
        acc_ref[...] = jnp.broadcast_to(shift_ref[...], acc_ref.shape)

    acc_ref[...] += jnp.dot(
        x_ref[...], w_ref[...], preferred_element_type=jnp.float32)

    @pl.when(k == pl.num_programs(2) - 1)
    def _():
        o_ref[...] = jnp.maximum(acc_ref[...], 0.0).astype(o_ref.dtype)


# ---------------------------------------------------------------------------
# One-time weight preparation (model-load time, NOT per call)
# ---------------------------------------------------------------------------
def prepare_fc_block_params(weight, bias, gamma, beta, running_mean,
                            running_var, eps=1e-5,
                            compute_dtype=jnp.bfloat16, tn=512, tk=512):
    """Fold BN + bias into the transposed weight, pad to tile-aligned shapes,
    and cast the weight to `compute_dtype` (bf16 by default: the kernel is
    weight-HBM-bound at small batch; accumulation stays f32)."""
    assert tn % 128 == 0 and tk % 128 == 0
    planes, inplanes = weight.shape

    scale = gamma / jnp.sqrt(running_var + eps)                  # (planes,)
    w_folded = weight.T * scale[None, :]                         # (K, N)
    shift = (beta + scale * (bias - running_mean)).reshape(1, -1)

    K_pad, tk_eff = _tile_and_pad(inplanes, tk)
    N_pad, tn_eff = _tile_and_pad(planes, tn)

    w_folded = jnp.pad(w_folded, ((0, K_pad - inplanes), (0, N_pad - planes)))
    shift = jnp.pad(shift, ((0, 0), (0, N_pad - planes)))
    if compute_dtype is not None:
        w_folded = w_folded.astype(compute_dtype)

    return {
        "w": w_folded,                        # (K_pad, N_pad), compute dtype
        "shift": shift.astype(jnp.float32),   # (1, N_pad)
        "in_features": inplanes,
        "out_features": planes,
        "tn_eff": tn_eff,
        "tk_eff": tk_eff,
    }


# ---------------------------------------------------------------------------
# Per-call forward
# ---------------------------------------------------------------------------
def fc_block_forward(x, params, *, tm=256):
    """x: (B, inplanes). Weights come pre-folded/padded/cast from prep."""
    w = params["w"]
    shift = params["shift"]
    K = params["in_features"]
    N = params["out_features"]
    tn_eff = params["tn_eff"]
    tk_eff = params["tk_eff"]

    B, Kx = x.shape
    assert Kx == K, (Kx, K)
    K_pad, N_pad = w.shape
    out_dtype = x.dtype

    # Activations follow the pre-cast weight dtype so the MXU runs natively.
    if x.dtype != w.dtype:
        x = x.astype(w.dtype)

    # Sublane rounding is dtype-aware: bf16 packs 16 rows per vreg.
    sublane = 16 if w.dtype == jnp.bfloat16 else 8
    tm_eff = min(tm, _round_up(B, sublane))
    # Shrink tm while M-padding waste exceeds ~12.5% (e.g. B=300 with tm=256).
    while tm_eff > sublane and (_round_up(B, tm_eff) - B) * 8 > B:
        tm_eff = max(_round_up(tm_eff // 2, sublane), sublane)
    M_pad = _round_up(B, tm_eff)

    # v7x has 2 TensorCores: expose >= 2 parallel blocks when we can.
    if (M_pad // tm_eff) * (N_pad // tn_eff) < 2 and tn_eff % 256 == 0:
        tn_eff //= 2

    xb = x.dtype.itemsize
    wb = w.dtype.itemsize
    ob = jnp.dtype(out_dtype).itemsize

    def vmem_estimate(tk, w_bufs, n_ksteps):
        acc = tm_eff * tn_eff * 4 if n_ksteps > 1 else 0
        return (2 * tm_eff * tk * xb + w_bufs * tk * tn_eff * wb
                + 2 * tn_eff * 4 + 2 * tm_eff * tn_eff * ob + acc)

    n_ksteps = K_pad // tk_eff
    grid_m = M_pad // tm_eff
    # Deeper weight pipelining when there is very little compute per tile.
    w_bufs = 3 if (n_ksteps > 1 and grid_m == 1) else 2
    est = vmem_estimate(tk_eff, w_bufs, n_ksteps)
    vmem_budget = 40 * 1024 * 1024          # headroom under v7x's 64 MiB / TC
    while est > vmem_budget and tk_eff % 256 == 0:
        tk_eff //= 2
        n_ksteps = K_pad // tk_eff
        w_bufs = 3 if (n_ksteps > 1 and grid_m == 1) else 2
        est = vmem_estimate(tk_eff, w_bufs, n_ksteps)

    grid_n = N_pad // tn_eff

    # Only the (small) activation is padded per call; weights were padded once
    # at prep time.
    if M_pad != B or K_pad != K:
        x = jnp.pad(x, ((0, M_pad - B), (0, K_pad - K)))

    cost = pl.CostEstimate(
        flops=2 * M_pad * N_pad * K_pad,
        transcendentals=0,
        bytes_accessed=(M_pad * K_pad * xb + K_pad * N_pad * wb
                        + N_pad * 4 + M_pad * N_pad * ob))
    vmem_limit = int(min(48 * 1024 * 1024,
                         max(32 * 1024 * 1024, est + 8 * 1024 * 1024)))

    if n_ksteps == 1:
        # Single-K fast path (common FC-head case): fused epilogue, no scratch.
        out = pl.pallas_call(
            _fc_block_kernel_single_k,
            out_shape=jax.ShapeDtypeStruct((M_pad, N_pad), out_dtype),
            grid_spec=pltpu.PrefetchScalarGridSpec(
                num_scalar_prefetch=0,
                grid=(grid_m, grid_n),
                in_specs=[
                    pl.BlockSpec((tm_eff, K_pad), lambda i, j: (i, 0)),
                    pl.BlockSpec((K_pad, tn_eff), lambda i, j: (0, j)),
                    pl.BlockSpec((1, tn_eff), lambda i, j: (0, j)),
                ],
                out_specs=pl.BlockSpec((tm_eff, tn_eff), lambda i, j: (i, j)),
            ),
            compiler_params=pltpu.CompilerParams(
                dimension_semantics=("parallel", "parallel"),
                vmem_limit_bytes=vmem_limit),
            cost_estimate=cost,
        )(x, w, shift)
    else:
        if w_bufs == 3:
            w_spec = pl.BlockSpec((tk_eff, tn_eff), lambda i, j, k: (k, j),
                                  pipeline_mode=pl.Buffered(3))
        else:
            w_spec = pl.BlockSpec((tk_eff, tn_eff), lambda i, j, k: (k, j))
        out = pl.pallas_call(
            _fc_block_kernel_multi_k,
            out_shape=jax.ShapeDtypeStruct((M_pad, N_pad), out_dtype),
            grid_spec=pltpu.PrefetchScalarGridSpec(
                num_scalar_prefetch=0,
                grid=(grid_m, grid_n, n_ksteps),
                in_specs=[
                    pl.BlockSpec((tm_eff, tk_eff), lambda i, j, k: (i, k)),
                    w_spec,
                    pl.BlockSpec((1, tn_eff), lambda i, j, k: (0, j)),
                ],
                out_specs=pl.BlockSpec((tm_eff, tn_eff),
                                       lambda i, j, k: (i, j)),
                scratch_shapes=[pltpu.VMEM((tm_eff, tn_eff), jnp.float32)],
            ),
            compiler_params=pltpu.CompilerParams(
                dimension_semantics=("parallel", "parallel", "arbitrary"),
                vmem_limit_bytes=vmem_limit),
            cost_estimate=cost,
        )(x, w, shift)

    # Slice off padding.
    return out[:B, :N]


def reference_forward(x, weight, bias, gamma, beta, running_mean, running_var,
                      eps=1e-5):
    y = x @ weight.T + bias
    y = (y - running_mean) / jnp.sqrt(running_var + eps) * gamma + beta
    return jnp.maximum(y, 0.0)


if __name__ == "__main__":
    B, inplanes, planes = 8, 32, 64

    key = jax.random.PRNGKey(0)
    kx, kw, kb, kg, kbeta, km, kv = jax.random.split(key, 7)

    x = jax.random.normal(kx, (B, inplanes), dtype=jnp.float32)
    # nn.Linear params: weight (planes, inplanes), bias (planes,)
    weight = jax.random.normal(kw, (planes, inplanes), dtype=jnp.float32) * 0.1
    bias = jax.random.normal(kb, (planes,), dtype=jnp.float32) * 0.1
    # BatchNorm1d params / running stats (deterministic synthetic values)
    gamma = 1.0 + 0.1 * jax.random.normal(kg, (planes,), dtype=jnp.float32)
    beta = 0.1 * jax.random.normal(kbeta, (planes,), dtype=jnp.float32)
    running_mean = 0.1 * jax.random.normal(km, (planes,), dtype=jnp.float32)
    running_var = jnp.abs(jax.random.normal(kv, (planes,), dtype=jnp.float32)) + 0.5

    ref = reference_forward(x, weight, bias, gamma, beta, running_mean,
                            running_var)

    # f32 weight path: tight tolerance vs the f32 reference.
    params_f32 = prepare_fc_block_params(
        weight, bias, gamma, beta, running_mean, running_var,
        compute_dtype=jnp.float32)
    out_f32 = jax.block_until_ready(fc_block_forward(x, params_f32))
    assert out_f32.shape == (B, planes)
    assert jnp.allclose(out_f32, ref, atol=2e-5, rtol=2e-5), "f32 mismatch"

    # Default bf16 weight path (half the weight HBM traffic; f32 accumulate).
    params_bf16 = prepare_fc_block_params(
        weight, bias, gamma, beta, running_mean, running_var)
    out_bf16 = jax.block_until_ready(fc_block_forward(x, params_bf16))
    assert out_bf16.shape == (B, planes)
    assert jnp.allclose(out_bf16, ref, atol=5e-2, rtol=5e-2), "bf16 mismatch"

    print("KERNEL_OK")
</pallas_src>

<mosaic_0001>
module attributes {stable_mosaic.version = 11 : i64} {
  func.func @_fc_block_kernel_single_k(%arg0: i32, %arg1: i32, %arg2: memref<8x128xf32, #tpu.memory_space<vmem>>, %arg3: memref<128x128xf32, #tpu.memory_space<vmem>>, %arg4: memref<1x128xf32, #tpu.memory_space<vmem>>, %arg5: memref<8x128xf32, #tpu.memory_space<vmem>>) attributes {dimension_semantics = [#tpu.dimension_semantics<parallel>, #tpu.dimension_semantics<parallel>], iteration_bounds = array<i64: 1, 1>, scalar_prefetch = 0 : i64, scratch_operands = 0 : i64, tpu.core_type = #tpu.core_type<tc>, window_params = [{transform_indices = @transform_0, window_bounds = array<i64: 8, 128>}, {transform_indices = @transform_1, window_bounds = array<i64: 128, 128>}, {transform_indices = @transform_2, window_bounds = array<i64: 1, 128>}, {transform_indices = @transform_3, window_bounds = array<i64: 8, 128>}]} {
    %c0 = arith.constant 0 : index
    %c0_0 = arith.constant 0 : index
    %0 = vector.load %arg2[%c0, %c0_0] : memref<8x128xf32, #tpu.memory_space<vmem>>, vector<8x128xf32>
    %c0_1 = arith.constant 0 : index
    %c0_2 = arith.constant 0 : index
    %1 = vector.load %arg3[%c0_1, %c0_2] : memref<128x128xf32, #tpu.memory_space<vmem>>, vector<128x128xf32>
    %cst = arith.constant dense<0.000000e+00> : vector<8x128xf32>
    %2 = tpu.matmul %0, %1, %cst {dimension_numbers = #tpu.dot_dimension_numbers<[1], [0], [0], [1], [0, 0, 1, 1], [], []>} : vector<8x128xf32>, vector<128x128xf32>, vector<8x128xf32> -> vector<8x128xf32>
    %c0_3 = arith.constant 0 : index
    %c0_4 = arith.constant 0 : index
    %3 = vector.load %arg4[%c0_3, %c0_4] : memref<1x128xf32, #tpu.memory_space<vmem>>, vector<1x128xf32>
    %4 = vector.broadcast %3 : vector<1x128xf32> to vector<8x128xf32>
    %5 = arith.addf %2, %4 : vector<8x128xf32>
    %cst_5 = arith.constant 0.000000e+00 : f32
    %6 = vector.broadcast %cst_5 : f32 to vector<8x128xf32>
    %7 = arith.maximumf %5, %6 : vector<8x128xf32>
    %c0_6 = arith.constant 0 : index
    %c0_7 = arith.constant 0 : index
    %8 = vector.load %arg5[%c0_6, %c0_7] : memref<8x128xf32, #tpu.memory_space<vmem>>, vector<8x128xf32>
    tpu.vector_store %arg5[%c0_6, %c0_7], %7 {strides = array<i32>} : memref<8x128xf32, #tpu.memory_space<vmem>>, vector<8x128xf32>,
    return
  }
  func.func @transform_0(%arg0: i32, %arg1: i32) -> (i32, i32) {
    %c0_i32 = arith.constant 0 : i32
    %c0_i32_0 = arith.constant 0 : i32
    return %arg0, %c0_i32 : i32, i32
  }
  func.func @transform_1(%arg0: i32, %arg1: i32) -> (i32, i32) {
    %c0_i32 = arith.constant 0 : i32
    %c0_i32_0 = arith.constant 0 : i32
    return %c0_i32, %arg1 : i32, i32
  }
  func.func @transform_2(%arg0: i32, %arg1: i32) -> (i32, i32) {
    %c0_i32 = arith.constant 0 : i32
    %c0_i32_0 = arith.constant 0 : i32
    return %c0_i32, %arg1 : i32, i32
  }
  func.func @transform_3(%arg0: i32, %arg1: i32) -> (i32, i32) {
    %c0_i32 = arith.constant 0 : i32
    return %arg0, %arg1 : i32, i32
  }
}

</mosaic_0001>

<bundles_post_ra>
// kernel: tpu_custom_call.1
= control target key start
LH: loop header
LB: loop body
LE: loop exit
PB: predicated region body
PF: predicated region fallthrough
CT: control target
= control target key end

     0   :  { %8 = vsyncpa [#allocation3], 0  ;;  %s318_s0 = inlined_call_operand.hbm [shape: f32[8,128], index: 0, kind: input, shape index: {}]   ;;  %s319_s1 = inlined_call_operand.hbm [shape: f32[128,128], index: 1, kind: input, shape index: {}]   ;;  %s320_s2 = inlined_call_operand.vmem [shape: f32[1,128], index: 2, kind: input, shape index: {}]   ;;  %s321_s3 = inlined_call_operand.hbm [shape: f32[8,128], index: 3, kind: output, shape index: {}]  }
   0x1   :  { %9 = vsyncpa [#allocation6], 0 }
   0x2   :  { %10 = vsyncpa [#allocation4], 0  ;;  %s279_s12 = smov [#allocation2]   ;;  %s280_s14 = smov [#allocation5]  }
   0x3   :  { %s17_s13 = sshll.u32 %s279_s12, 4  ;;  %s26_s15 = sshll.u32 %s280_s14, 4  ;;  %s18_s13 = int_to_ptr.vmem [resolvable:$true] %s17_s13  ;;  %s27_s15 = int_to_ptr.vmem [resolvable:$true] %s26_s15 }
   0x4   :  { %s221_s16 = scalar_lea.vmem %s18_s13, 128  ;;  %p226_p1 = scmp.lt.s32.totalorder %s18_s13, %s18_s13 }
   0x5   :  { %p222_p0 = scmp.ne.s32.totalorder %s18_s13, %s221_s16  ;;  %p227_p2 = scmp.lt.s32.totalorder %s221_s16, %s221_s16 }
   0x7   :  { %p228_p3 = por %p227_p2, %p226_p1 }
   0x9   :  { %p229_p4 = pnand %p228_p3, %p222_p0 }
   0xb   :  { %232 = shalt.err (!%p229_p4)
}
   0xc   :  { %20 = dma.hbm_to_vmem [thread:$0]  %s318_s0, 128, %s18_s13, [#allocation3]  }
   0xd   :  { %s241_s19 = scalar_lea.vmem %s27_s15, 2048  ;;  %p246_p6 = scmp.lt.s32.totalorder %s27_s15, %s27_s15 }
   0xe   :  { %p242_p5 = scmp.ne.s32.totalorder %s27_s15, %s241_s19  ;;  %p247_p7 = scmp.lt.s32.totalorder %s241_s19, %s241_s19 }
  0x10   :  { %p248_p8 = por %p247_p7, %p246_p6 }
  0x12   :  { %p249_p9 = pnand %p248_p8, %p242_p5 }
  0x14   :  { %252 = shalt.err (!%p249_p9)
}
  0x15   :  { %s281_s20 = smov 128   ;;  %s282_s21 = smov 8  }
  0x16   :  { %32 = dma.hbm_to_vmem [thread:$0]  %s319_s1, 2048, %s27_s15, [#allocation6], %s281_s20, %s281_s20, %s282_s21  }
  0x17   :  { %273 = dma.done.wait [#allocation3], 128  }
  0x18   :  { %274 = vsyncadd [#allocation3], 4294967168 }
  0x19   :  { %275 = dma.done.wait [#allocation6], 2048  }
  0x1a   :  { %276 = vsyncadd [#allocation6], 4294965248  ;;  %v283_v0 = vmov 0.0   ;;  %vm284_vm0 = vmmov 0   ;;  %v57_v1 = vld [vmem:[#allocation5 + $0x78] sm:$0xff]  ;;  %v56_v2 = vld [vmem:[#allocation5 + $0x70] sm:$0xff] }
  0x1b   :  { %171 = vmatprep.subr.mxu0 %v283_v0  ;;  %203 = vmatprep.mubr.msk.f32.mxu0 %vm284_vm0, %v283_v0  ;;  %v55_v3 = vld [vmem:[#allocation5 + $0x68] sm:$0xff]  ;;  %v54_v4 = vld [vmem:[#allocation5 + $0x60] sm:$0xff]  ;;  %v53_v5 = vld [vmem:[#allocation5 + $0x58] sm:$0xff]  ;;  %s285_s24 = smov [#allocation7]  }
  0x1c   :  { %172 = vmatpush3.msra.mxu0 %v57_v1  ;;  %v52_v6 = vld [vmem:[#allocation5 + $0x50] sm:$0xff]  ;;  %v51_v7 = vld [vmem:[#allocation5 + $0x48] sm:$0xff]  ;;  %v50_v8 = vld [vmem:[#allocation5 + $0x40] sm:$0xff]  ;;  %s143_s25 = sshll.u32 %s285_s24, 4  ;;  %s144_s25 = int_to_ptr.vmem [resolvable:$true] %s143_s25 }
  0x1d   :  { %173 = vmatprep.subr.mxu0 %v283_v0  ;;  %v49_v9 = vld [vmem:[#allocation5 + $0x38] sm:$0xff]  ;;  %v48_v10 = vld [vmem:[#allocation5 + $0x30] sm:$0xff]  ;;  %v47_v11 = vld [vmem:[#allocation5 + $0x28] sm:$0xff]  ;;  %s253_s26 = scalar_lea.vmem %s144_s25, 128  ;;  %p258_p11 = scmp.lt.s32.totalorder %s144_s25, %s144_s25 }
  0x1e   :  { %174 = vmatpush3.msra.mxu0 %v56_v2  ;;  %v46_v12 = vld [vmem:[#allocation5 + $0x20] sm:$0xff]  ;;  %v45_v13 = vld [vmem:[#allocation5 + $0x18] sm:$0xff]  ;;  %v44_v14 = vld [vmem:[#allocation5 + $0x10] sm:$0xff]  ;;  %p254_p10 = scmp.ne.s32.totalorder %s144_s25, %s253_s26  ;;  %p259_p12 = scmp.lt.s32.totalorder %s253_s26, %s253_s26 }
  0x1f   :  { %175 = vmatprep.subr.mxu0 %v283_v0  ;;  %v43_v15 = vld [vmem:[#allocation5 + $0x8] sm:$0xff]  ;;  %v42_v16 = vld [vmem:[#allocation5] sm:$0xff]  ;;  %v41_v17 = vld [vmem:[#allocation2] sm:$0xff] }
  0x20   :  { %176 = vmatpush3.msra.mxu0 %v55_v3  ;;  %v153_v18 = vld [vmem:[%s320_s2] ss:$0 sm:$0xff]  ;;  %p260_p13 = por %p259_p12, %p258_p11 }
  0x21   :  { %177 = vmatprep.subr.mxu0 %v283_v0 }
  0x22   :  { %178 = vmatpush3.msra.mxu0 %v54_v4  ;;  %p261_p0 = pnand %p260_p13, %p254_p10 }
  0x23   :  { %179 = vmatprep.subr.mxu0 %v283_v0 }
  0x24   :  { %180 = vmatpush3.msra.mxu0 %v53_v5 }
  0x25   :  { %181 = vmatprep.subr.mxu0 %v283_v0 }
  0x26   :  { %182 = vmatpush3.msra.mxu0 %v52_v6 }
  0x27   :  { %183 = vmatprep.subr.mxu0 %v283_v0 }
  0x28   :  { %184 = vmatpush3.msra.mxu0 %v51_v7 }
  0x29   :  { %185 = vmatprep.subr.mxu0 %v283_v0 }
  0x2a   :  { %186 = vmatpush3.msra.mxu0 %v50_v8 }
  0x2b   :  { %187 = vmatprep.subr.mxu0 %v283_v0 }
  0x2c   :  { %188 = vmatpush3.msra.mxu0 %v49_v9 }
  0x2d   :  { %189 = vmatprep.subr.mxu0 %v283_v0 }
  0x2e   :  { %190 = vmatpush3.msra.mxu0 %v48_v10 }
  0x2f   :  { %191 = vmatprep.subr.mxu0 %v283_v0 }
  0x30   :  { %192 = vmatpush3.msra.mxu0 %v47_v11 }
  0x31   :  { %193 = vmatprep.subr.mxu0 %v283_v0 }
  0x32   :  { %194 = vmatpush3.msra.mxu0 %v46_v12 }
  0x33   :  { %195 = vmatprep.subr.mxu0 %v283_v0 }
  0x34   :  { %196 = vmatpush3.msra.mxu0 %v45_v13 }
  0x35   :  { %197 = vmatprep.subr.mxu0 %v283_v0 }
  0x36   :  { %198 = vmatpush3.msra.mxu0 %v44_v14 }
  0x37   :  { %199 = vmatprep.subr.mxu0 %v283_v0 }
  0x38   :  { %200 = vmatpush3.msra.mxu0 %v43_v15 }
  0x39   :  { %201 = vmatprep.subr.mxu0 %v283_v0 }
  0x3a   :  { %202 = vmatpush3.msra.mxu0 %v42_v16 }
  0x3b   :  { %204 = vmatmul.mubr.f32.vlgmr.msra.gmra.mxu0 %v41_v17 }
  0xfb   :  { %v131_v19 = vpop.f32.mrf.mxu0 }
  0xfc   :  { %v132_v20 = vadd.f32 %v153_v18, %v131_v19 }
  0xfd   :  { %v205_v21 = vpop.f32.mrf.mxu0 }
  0xfe   :  { %v135_v22 = vmax.f32 %v132_v20, 0.0 }
 0x100   :  { %136 = vst [vmem:[#allocation7] sm:$0xff] %v135_v22 }
 0x101   :  { %264 = shalt.err (!%p261_p0)
}
 0x102   :  { %146 = dma.vmem_to_hbm [thread:$0]  %s144_s25, 128, %s321_s3, [#allocation4]  }
 0x103   :  { %277 = dma.done.wait [#allocation4], 128  }
 0x104   :  { %278 = vsyncadd [#allocation4], 4294967168 }
 0x105   :  { %150 = vsyncpa [#allocation3], 1 }
 0x106   :  { %151 = vsyncpa [#allocation6], 1 }
 0x107   :  { %152 = vsyncpa [#allocation4], 1 }

</bundles_post_ra>
